<compile_context>
chip_gen: v7x
topology: tpu7x:2x2x1
jax: 0.10.0
libtpu: 0.0.40
codegen_flags: <defaults>
</compile_context>

<pallas_src>
import functools

import jax
import jax.numpy as jnp
from jax.experimental import pallas as pl
from jax.experimental.pallas import tpu as pltpu


def _vae_kernel(x_ref, w_ref, b_ref, eps_ref, z_ref, mu_ref, lv_ref):
    """Fused mu/logvar matmul + reparameterization for one batch tile."""
    L = mu_ref.shape[-1]

    # Single MXU pass over the fused [D, 2L] bf16 weight; f32 accumulate.
    y = jnp.dot(x_ref[...].astype(jnp.bfloat16), w_ref[...],
                preferred_element_type=jnp.float32) + b_ref[...]      # [tb, 2L]

    # Views into the fused result (aligned when L is a multiple of 128).
    mu = y[:, :L]
    logvar = y[:, L:]

    # Reparameterization trick; keep everything f32 on the VPU/EUP (v5e-safe).
    z = mu + eps_ref[...] * jnp.exp(0.5 * logvar)

    # Direct region stores -- no concatenate, no slab temporary.
    z_ref[...] = z.astype(z_ref.dtype)
    mu_ref[...] = mu.astype(mu_ref.dtype)
    lv_ref[...] = logvar.astype(lv_ref.dtype)


@functools.partial(jax.jit, static_argnames=("block_b",))
def _vae_forward(x, w_cat, b_cat, eps, *, block_b):
    B, D = x.shape
    L2 = w_cat.shape[1]          # 2 * latent_dim
    L = L2 // 2
    grid = (B // block_b,)

    # Scoped-VMEM budget: double-buffered x/eps/outputs, single-buffered
    # (pinned) weight + bias; 2x headroom, clamped to a v7x-safe 64 MiB.
    need = (2 * block_b * D * 4          # x tiles (f32, 2 buffers)
            + 1 * D * L2 * 2             # fused weight (bf16, Buffered(1))
            + 1 * L2 * 4                 # fused bias
            + 2 * block_b * L * 4        # eps tiles (2 buffers)
            + 3 * 2 * block_b * L * 4)   # z / mu / logvar tiles (2 buffers each)
    vmem_limit = int(min(max(2 * need, 16 << 20), 64 << 20))

    pinned = pl.Buffered(1)              # constant index_map -> no double-buffer
    out_sd = jax.ShapeDtypeStruct((B, L), jnp.float32)

    return pl.pallas_call(
        _vae_kernel,
        out_shape=(out_sd, out_sd, out_sd),                           # z, mu, logvar
        grid_spec=pltpu.PrefetchScalarGridSpec(
            num_scalar_prefetch=0,
            grid=grid,
            in_specs=[
                pl.BlockSpec((block_b, D), lambda i: (i, 0)),          # x tile
                pl.BlockSpec((D, L2), lambda i: (0, 0),
                             pipeline_mode=pinned),                    # fused W (pinned)
                pl.BlockSpec((1, L2), lambda i: (0, 0),
                             pipeline_mode=pinned),                    # fused bias (pinned)
                pl.BlockSpec((block_b, L), lambda i: (i, 0)),          # eps tile
            ],
            out_specs=(
                pl.BlockSpec((block_b, L), lambda i: (i, 0)),          # z
                pl.BlockSpec((block_b, L), lambda i: (i, 0)),          # mu
                pl.BlockSpec((block_b, L), lambda i: (i, 0)),          # logvar
            ),
        ),
        compiler_params=pltpu.CompilerParams(
            dimension_semantics=("parallel",),
            vmem_limit_bytes=vmem_limit),
    )(x, w_cat, b_cat, eps)


def _pick_block_b(B):
    """Divides B, sublane-aligned, prefers >=2 grid steps (v7x), cap at 512."""
    for cand in (512, 256, 128, 64, 32, 16, 8):
        if B % cand == 0 and B // cand >= 2:
            return cand
    return B


def fuse_params(w_mu, b_mu, w_logvar, b_logvar):
    """One-time fusion of the two Linear layers (do NOT redo per call).

    w_*: [D, L] (transpose of torch's [L, D]); b_*: [L].
    Weight is cast to bf16 once here (halves weight DMA / VMEM footprint).
    """
    w_cat = jnp.concatenate([w_mu, w_logvar], axis=1).astype(jnp.bfloat16)   # [D, 2L]
    b_cat = jnp.concatenate([b_mu, b_logvar]).reshape(1, -1).astype(jnp.float32)
    return {"w_cat": w_cat, "b_cat": b_cat}


def variational_layer(x, params, key, *, block_b=None):
    """x: [B, D]; params from fuse_params. Returns (z, mu, logvar, eps), each [B, L]."""
    B, D = x.shape
    L = params["w_cat"].shape[1] // 2

    if block_b is None:
        block_b = _pick_block_b(B)

    eps = jax.random.normal(key, (B, L), jnp.float32)

    pad = (-B) % block_b
    if pad:                                   # remainder handling: zero-pad batch
        x_p = jnp.pad(x, ((0, pad), (0, 0)))
        eps_p = jnp.pad(eps, ((0, pad), (0, 0)))
    else:
        x_p, eps_p = x, eps

    z, mu, logvar = _vae_forward(x_p, params["w_cat"], params["b_cat"], eps_p,
                                 block_b=block_b)
    if pad:
        z, mu, logvar = z[:B], mu[:B], logvar[:B]
    return z, mu, logvar, eps


def init_params(key, input_dim, latent_dim):
    """Deterministic init mimicking nn.Linear's U(-1/sqrt(fan_in), 1/sqrt(fan_in))."""
    k1, k2, k3, k4 = jax.random.split(key, 4)
    bound = 1.0 / jnp.sqrt(jnp.float32(input_dim))
    # stored as [input_dim, latent_dim] (transpose of PyTorch's [latent, input])
    w_mu = jax.random.uniform(k1, (input_dim, latent_dim), jnp.float32, -bound, bound)
    b_mu = jax.random.uniform(k2, (latent_dim,), jnp.float32, -bound, bound)
    w_lv = jax.random.uniform(k3, (input_dim, latent_dim), jnp.float32, -bound, bound)
    b_lv = jax.random.uniform(k4, (latent_dim,), jnp.float32, -bound, bound)
    return w_mu, b_mu, w_lv, b_lv


if __name__ == "__main__":
    key = jax.random.PRNGKey(0)
    B, input_dim, latent_dim = 8, 32, 16

    kx, kp, ke = jax.random.split(key, 3)
    x = jax.random.normal(kx, (B, input_dim), jnp.float32)
    w_mu, b_mu, w_lv, b_lv = init_params(kp, input_dim, latent_dim)
    params = fuse_params(w_mu, b_mu, w_lv, b_lv)

    z, mu, logvar, eps = variational_layer(x, params, ke)
    jax.block_until_ready((z, mu, logvar, eps))

    # Reference check (same bf16-weight matmul, f32 everywhere else), and z
    # against the reparameterization formula using the wrapper's eps.
    y_ref = jnp.dot(x.astype(jnp.bfloat16), params["w_cat"],
                    preferred_element_type=jnp.float32) + params["b_cat"]
    mu_ref, lv_ref = y_ref[:, :latent_dim], y_ref[:, latent_dim:]
    z_ref = mu_ref + eps * jnp.exp(0.5 * lv_ref)

    assert z.shape == (B, latent_dim) and mu.shape == (B, latent_dim)
    assert logvar.shape == (B, latent_dim)
    assert jnp.allclose(mu, mu_ref, atol=2e-3, rtol=2e-3), "mu mismatch"
    assert jnp.allclose(logvar, lv_ref, atol=2e-3, rtol=2e-3), "logvar mismatch"
    assert jnp.allclose(z, z_ref, atol=2e-3, rtol=2e-3), "z mismatch"
    assert bool(jnp.all(jnp.isfinite(z))), "z not finite"

    print("KERNEL_OK")
</pallas_src>

<mosaic_0001>
module attributes {stable_mosaic.version = 11 : i64} {
  func.func @_vae_kernel(%arg0: i32, %arg1: memref<8x32xf32, #tpu.memory_space<vmem>>, %arg2: memref<32x32xbf16, #tpu.memory_space<vmem>>, %arg3: memref<1x32xf32, #tpu.memory_space<vmem>>, %arg4: memref<8x16xf32, #tpu.memory_space<vmem>>, %arg5: memref<8x16xf32, #tpu.memory_space<vmem>>, %arg6: memref<8x16xf32, #tpu.memory_space<vmem>>, %arg7: memref<8x16xf32, #tpu.memory_space<vmem>>) attributes {dimension_semantics = [#tpu.dimension_semantics<parallel>], iteration_bounds = array<i64: 1>, scalar_prefetch = 0 : i64, scratch_operands = 0 : i64, tpu.core_type = #tpu.core_type<tc>, window_params = [{transform_indices = @transform_0, window_bounds = array<i64: 8, 32>}, {pipeline_mode = #tpu.pipeline_mode<synchronous>, transform_indices = @transform_1, window_bounds = array<i64: 32, 32>}, {pipeline_mode = #tpu.pipeline_mode<synchronous>, transform_indices = @transform_2, window_bounds = array<i64: 1, 32>}, {transform_indices = @transform_3, window_bounds = array<i64: 8, 16>}, {transform_indices = @transform_4, window_bounds = array<i64: 8, 16>}, {transform_indices = @transform_5, window_bounds = array<i64: 8, 16>}, {transform_indices = @transform_6, window_bounds = array<i64: 8, 16>}]} {
    %c0 = arith.constant 0 : index
    %c0_0 = arith.constant 0 : index
    %0 = vector.load %arg1[%c0, %c0_0] : memref<8x32xf32, #tpu.memory_space<vmem>>, vector<8x32xf32>
    %1 = arith.truncf %0 : vector<8x32xf32> to vector<8x32xbf16>
    %c0_1 = arith.constant 0 : index
    %c0_2 = arith.constant 0 : index
    %2 = vector.load %arg2[%c0_1, %c0_2] : memref<32x32xbf16, #tpu.memory_space<vmem>>, vector<32x32xbf16>
    %cst = arith.constant dense<0.000000e+00> : vector<8x32xf32>
    %3 = tpu.matmul %1, %2, %cst {dimension_numbers = #tpu.dot_dimension_numbers<[1], [0], [0], [1], [0, 0, 1, 1], [], []>} : vector<8x32xbf16>, vector<32x32xbf16>, vector<8x32xf32> -> vector<8x32xf32>
    %c0_3 = arith.constant 0 : index
    %c0_4 = arith.constant 0 : index
    %4 = vector.load %arg3[%c0_3, %c0_4] : memref<1x32xf32, #tpu.memory_space<vmem>>, vector<1x32xf32>
    %5 = vector.broadcast %4 : vector<1x32xf32> to vector<8x32xf32>
    %6 = arith.addf %3, %5 : vector<8x32xf32>
    %7 = vector.extract_strided_slice %6 {offsets = [0, 0], sizes = [8, 16], strides = [1, 1]} : vector<8x32xf32> to vector<8x16xf32>
    %8 = vector.extract_strided_slice %6 {offsets = [0, 16], sizes = [8, 16], strides = [1, 1]} : vector<8x32xf32> to vector<8x16xf32>
    %c0_5 = arith.constant 0 : index
    %c0_6 = arith.constant 0 : index
    %9 = vector.load %arg4[%c0_5, %c0_6] : memref<8x16xf32, #tpu.memory_space<vmem>>, vector<8x16xf32>
    %cst_7 = arith.constant 5.000000e-01 : f32
    %10 = vector.broadcast %cst_7 : f32 to vector<8x16xf32>
    %11 = arith.mulf %10, %8 : vector<8x16xf32>
    %12 = math.exp %11 : vector<8x16xf32>
    %13 = arith.mulf %9, %12 : vector<8x16xf32>
    %14 = arith.addf %7, %13 : vector<8x16xf32>
    %c0_8 = arith.constant 0 : index
    %c0_9 = arith.constant 0 : index
    %15 = vector.load %arg5[%c0_8, %c0_9] : memref<8x16xf32, #tpu.memory_space<vmem>>, vector<8x16xf32>
    tpu.vector_store %arg5[%c0_8, %c0_9], %14 {strides = array<i32>} : memref<8x16xf32, #tpu.memory_space<vmem>>, vector<8x16xf32>,
    %c0_10 = arith.constant 0 : index
    %c0_11 = arith.constant 0 : index
    %16 = vector.load %arg6[%c0_10, %c0_11] : memref<8x16xf32, #tpu.memory_space<vmem>>, vector<8x16xf32>
    tpu.vector_store %arg6[%c0_10, %c0_11], %7 {strides = array<i32>} : memref<8x16xf32, #tpu.memory_space<vmem>>, vector<8x16xf32>,
    %c0_12 = arith.constant 0 : index
    %c0_13 = arith.constant 0 : index
    %17 = vector.load %arg7[%c0_12, %c0_13] : memref<8x16xf32, #tpu.memory_space<vmem>>, vector<8x16xf32>
    tpu.vector_store %arg7[%c0_12, %c0_13], %8 {strides = array<i32>} : memref<8x16xf32, #tpu.memory_space<vmem>>, vector<8x16xf32>,
    return
  }
  func.func @transform_0(%arg0: i32) -> (i32, i32) {
    %c0_i32 = arith.constant 0 : i32
    %c0_i32_0 = arith.constant 0 : i32
    return %arg0, %c0_i32 : i32, i32
  }
  func.func @transform_1(%arg0: i32) -> (i32, i32) {
    %c0_i32 = arith.constant 0 : i32
    %c0_i32_0 = arith.constant 0 : i32
    %c0_i32_1 = arith.constant 0 : i32
    return %c0_i32, %c0_i32_0 : i32, i32
  }
  func.func @transform_2(%arg0: i32) -> (i32, i32) {
    %c0_i32 = arith.constant 0 : i32
    %c0_i32_0 = arith.constant 0 : i32
    %c0_i32_1 = arith.constant 0 : i32
    return %c0_i32, %c0_i32_0 : i32, i32
  }
  func.func @transform_3(%arg0: i32) -> (i32, i32) {
    %c0_i32 = arith.constant 0 : i32
    %c0_i32_0 = arith.constant 0 : i32
    return %arg0, %c0_i32 : i32, i32
  }
  func.func @transform_4(%arg0: i32) -> (i32, i32) {
    %c0_i32 = arith.constant 0 : i32
    %c0_i32_0 = arith.constant 0 : i32
    return %arg0, %c0_i32 : i32, i32
  }
  func.func @transform_5(%arg0: i32) -> (i32, i32) {
    %c0_i32 = arith.constant 0 : i32
    %c0_i32_0 = arith.constant 0 : i32
    return %arg0, %c0_i32 : i32, i32
  }
  func.func @transform_6(%arg0: i32) -> (i32, i32) {
    %c0_i32 = arith.constant 0 : i32
    %c0_i32_0 = arith.constant 0 : i32
    return %arg0, %c0_i32 : i32, i32
  }
}

</mosaic_0001>

<bundles_post_ra>
// kernel: _vae_forward.1
= control target key start
LH: loop header
LB: loop body
LE: loop exit
PB: predicated region body
PF: predicated region fallthrough
CT: control target
= control target key end

     0   :  { %12 = vsyncpa [#allocation3], 0  ;;  %s447_s0 = inlined_call_operand.hbm [shape: f32[8,32], index: 0, kind: input, shape index: {}]   ;;  %s448_s1 = inlined_call_operand.hbm [shape: bf16[32,32], index: 1, kind: input, shape index: {}]   ;;  %s449_s2 = inlined_call_operand.vmem [shape: f32[1,32], index: 2, kind: input, shape index: {}]   ;;  %s450_s3 = inlined_call_operand.vmem [shape: f32[8,16], index: 3, kind: input, shape index: {}]   ;;  %s451_s4 = inlined_call_operand.hbm [shape: f32[8,16], index: 4, kind: output, shape index: {0}]   ;;  %s452_s5 = inlined_call_operand.hbm [shape: f32[8,16], index: 5, kind: output, shape index: {1}]   ;;  %s453_s6 = inlined_call_operand.hbm [shape: f32[8,16], index: 6, kind: output, shape index: {2}]  }
   0x1   :  { %13 = vsyncpa [#allocation6], 0 }
   0x2   :  { %14 = vsyncpa [#allocation4], 0 }
   0x3   :  { %15 = vsyncpa [#allocation9], 0  ;;  %s326_s21 = smov [#allocation2]   ;;  %s327_s23 = smov [#allocation5]  }
   0x4   :  { %s22_s22 = sshll.u32 %s326_s21, 4  ;;  %s31_s24 = sshll.u32 %s327_s23, 4  ;;  %s23_s22 = int_to_ptr.vmem [resolvable:$true] %s22_s22  ;;  %s371_s24 = int_to_ptr.vmem [resolvable:$true] %s31_s24 }
   0x5   :  { %s208_s27 = scalar_lea.hbm %s447_s0, 128 }
   0x6   :  { %p209_p0 = scmp.ne.s32.totalorder %s447_s0, %s208_s27  ;;  %p212_p1 = scmp.lt.u32.totalorder %s208_s27, %s447_s0 }
   0x8   :  { %p214_p2 = pnand %p212_p1, %p209_p0 }
   0xa   :  { %217 = shalt.err (!%p214_p2)
}
   0xb   :  { %s218_s8 = scalar_lea.vmem %s23_s22, 128  ;;  %p223_p4 = scmp.lt.s32.totalorder %s23_s22, %s23_s22 }
   0xc   :  { %p219_p3 = scmp.ne.s32.totalorder %s23_s22, %s218_s8  ;;  %p224_p5 = scmp.lt.s32.totalorder %s218_s8, %s218_s8 }
   0xe   :  { %p225_p6 = por %p224_p5, %p223_p4 }
  0x10   :  { %p226_p7 = pnand %p225_p6, %p219_p3 }
  0x12   :  { %229 = shalt.err (!%p226_p7)
}
  0x13   :  { %25 = dma.hbm_to_vmem [thread:$0]  %s447_s0, 128, %s23_s22, [#allocation3]  }
  0x14   :  { %s230_s13 = scalar_lea.hbm %s448_s1, 256 }
  0x15   :  { %p231_p8 = scmp.ne.s32.totalorder %s448_s1, %s230_s13  ;;  %p234_p9 = scmp.lt.u32.totalorder %s230_s13, %s448_s1 }
  0x17   :  { %p236_p10 = pnand %p234_p9, %p231_p8 }
  0x19   :  { %239 = shalt.err (!%p236_p10)
}
  0x1a   :  { %s240_s18 = scalar_lea.vmem %s371_s24, 256  ;;  %p245_p12 = scmp.lt.s32.totalorder %s371_s24, %s371_s24 }
  0x1b   :  { %p241_p11 = scmp.ne.s32.totalorder %s371_s24, %s240_s18  ;;  %p246_p13 = scmp.lt.s32.totalorder %s240_s18, %s240_s18 }
  0x1d   :  { %p247_p0 = por %p246_p13, %p245_p12 }
  0x1f   :  { %p248_p1 = pnand %p247_p0, %p241_p11 }
  0x21   :  { %251 = shalt.err (!%p248_p1)
}
  0x22   :  { %s328_s0 = smov 64   ;;  %s329_s19 = smov 4  }
  0x23   :  { %37 = dma.hbm_to_vmem [thread:$0]  %s448_s1, 256, %s371_s24, [#allocation6], %s328_s0, %s328_s0, %s329_s19  }
  0x24   :  { %318 = dma.done.wait [#allocation3], 128  }
  0x25   :  { %319 = vsyncadd [#allocation3], 4294967168 }
  0x26   :  { %320 = dma.done.wait [#allocation6], 256  }
  0x27   :  { %321 = vsyncadd [#allocation6], 4294967040  ;;  %v330_v0 = vmov 0.0   ;;  %vm331_vm0 = vmmov 0   ;;  %v204_v1 = vld [vmem:[#allocation5] sm:$0xff]   ;;  %v205_v2 = vld [vmem:[#allocation5 + $0x8] sm:$0xff]  }
  0x28   :  { %186 = vmatprep.subr.bf16.mxu0 %v330_v0  ;;  %190 = vmatprep.mubr.msk.bf16.mxu0 %vm331_vm0, %v330_v0  ;;  %v49_v3 = vld [vmem:[#allocation2] sm:$0xff]  ;;  %vm74_vm1 = vcmask 261120   ;;  %vm128_vm2 = vcmask 130048   ;;  %s332_s1 = smov [#allocation8]  }
  0x29   :  { %187 = vmatpush3.bf16.msra.mxu0 %v204_v1  ;;  %v50_v4 = vpack.c.bf16 %v49_v3, %v49_v3  ;;  %v179_v5 = vld [vmem:[%s449_s2] ss:$0 sm:$0xff]  ;;  %s152_s24 = sshll.u32 %s332_s1, 4  ;;  %s153_s24 = int_to_ptr.vmem [resolvable:$true] %s152_s24 }
  0x2a   :  { %188 = vmatprep.subr.bf16.mxu0 %v330_v0  ;;  %s252_s25 = scalar_lea.vmem %s153_s24, 128  ;;  %p257_p3 = scmp.lt.s32.totalorder %s153_s24, %s153_s24 }
  0x2b   :  { %p253_p2 = scmp.ne.s32.totalorder %s153_s24, %s252_s25  ;;  %p258_p4 = scmp.lt.s32.totalorder %s252_s25, %s252_s25 }
  0x2d   :  { %189 = vmatpush3.bf16.msra.mxu0 %v205_v2  ;;  %p259_p5 = por %p258_p4, %p257_p3 }
  0x2f   :  { %p260_p6 = pnand %p259_p5, %p253_p2 }
  0x30   :  { %191 = vmatmul.mubr.msk.bf16.vlgmr.msra.gmra.mrb[0].mxu0 %vm74_vm1, %v50_v4 }
 0x103   :  { %v112_v6 = vpop.f32.mrb[0].mxu0 }
 0x104   :  { %v113_v7 = vadd.f32 %v179_v5, %v112_v6  ;;  %v192_v8 = vpop.f32.mrb[1].mxu0 }
 0x105   :  { %v115_v9 = vpop.f32.mrb[2].mxu0 }
 0x106   :  { %v119_v10 = vmul.f32 0.5, %v113_v7  ;;  %v193_v11 = vpop.f32.mrb[3].mxu0  ;;  %130 = vst.msk [vmem:[#allocation8] sm:$0xff] %vm128_vm2, %v113_v7 }
 0x108   :  { %v120_v12 = vmul.f32 1.442695, %v119_v10 }
 0x10a   :  { %206 = vpow2.f32 %v120_v12 }
 0x10b   :  { %263 = shalt.err (!%p260_p6)
}
 0x10c   :  { %s264_s27 = scalar_lea.hbm %s452_s5, 128 }
 0x10d   :  { %p265_p7 = scmp.ne.s32.totalorder %s452_s5, %s264_s27  ;;  %p268_p8 = scmp.lt.u32.totalorder %s264_s27, %s452_s5 }
 0x10f   :  { %p270_p9 = pnand %p268_p8, %p265_p7 }
 0x111   :  { %273 = shalt.err (!%p270_p9)
}
 0x112   :  { %155 = dma.vmem_to_hbm [thread:$0]  %s153_s24, 128, %s452_s5, [#allocation9]   ;;  %v118_v14 = vld [vmem:[%s450_s3] sm:$0xff] }
 0x113   :  { %s333_s10 = smov 112   ;;  %s334_s13 = smov [#allocation7]  }
 0x114   :  { %v207_v13 = vpop.eup %206  ;;  %s142_s14 = sshll.u32 %s334_s13, 4  ;;  %s335_s15 = smov [#allocation10]   ;;  %s143_s14 = int_to_ptr.vmem [resolvable:$true] %s142_s14 }
 0x115   :  { %123 = vrot.lane.b32.xlu0 %v207_v13, %s333_s10  ;;  %s162_s16 = sshll.u32 %s335_s15, 4  ;;  %s274_s5 = scalar_lea.vmem %s143_s14, 128  ;;  %s163_s16 = int_to_ptr.vmem [resolvable:$true] %s162_s16 }
 0x116   :  { %p275_p10 = scmp.ne.s32.totalorder %s143_s14, %s274_s5  ;;  %p279_p11 = scmp.lt.s32.totalorder %s143_s14, %s143_s14 }
 0x117   :  { %p280_p12 = scmp.lt.s32.totalorder %s274_s5, %s274_s5 }
 0x119   :  { %132 = vrot.lane.b32.xlu0 %v113_v7, %s333_s10  ;;  %p281_p13 = por %p280_p12, %p279_p11 }
 0x11b   :  { %p282_p0 = pnand %p281_p13, %p275_p10 }
 0x187   :  { %v124_v15 = vpop.permute.xlu0 %123 }
 0x188   :  { %v126_v16 = vmul.f32 %v124_v15, %v118_v14 }
 0x18a   :  { %v127_v17 = vadd.f32 %v126_v16, %v113_v7 }
 0x18b   :  { %v133_v18 = vpop.permute.xlu0 %132 }
 0x18c   :  { %135 = vst.msk [vmem:[#allocation10] sm:$0xff] %vm128_vm2, %v133_v18  ;;  %129 = vst.msk [vmem:[#allocation7] sm:$0xff] %vm128_vm2, %v127_v17 }
 0x18d   :  { %285 = shalt.err (!%p282_p0)
}
 0x18e   :  { %s286_s18 = scalar_lea.hbm %s451_s4, 128 }
 0x18f   :  { %p287_p1 = scmp.ne.s32.totalorder %s451_s4, %s286_s18  ;;  %p290_p2 = scmp.lt.u32.totalorder %s286_s18, %s451_s4 }
 0x191   :  { %p292_p3 = pnand %p290_p2, %p287_p1 }
 0x193   :  { %295 = shalt.err (!%p292_p3)
}
 0x194   :  { %145 = dma.vmem_to_hbm [thread:$0]  %s143_s14, 128, %s451_s4, [#allocation4]  }
 0x195   :  { %s296_s1 = scalar_lea.vmem %s163_s16, 128  ;;  %p301_p5 = scmp.lt.s32.totalorder %s163_s16, %s163_s16 }
 0x196   :  { %p297_p4 = scmp.ne.s32.totalorder %s163_s16, %s296_s1  ;;  %p302_p6 = scmp.lt.s32.totalorder %s296_s1, %s296_s1 }
 0x198   :  { %p303_p7 = por %p302_p6, %p301_p5 }
 0x19a   :  { %p304_p8 = pnand %p303_p7, %p297_p4 }
 0x19c   :  { %307 = shalt.err (!%p304_p8)
}
 0x19d   :  { %s308_s2 = scalar_lea.hbm %s453_s6, 128 }
 0x19e   :  { %p309_p9 = scmp.ne.s32.totalorder %s453_s6, %s308_s2  ;;  %p312_p10 = scmp.lt.u32.totalorder %s308_s2, %s453_s6 }
 0x1a0   :  { %p314_p11 = pnand %p312_p10, %p309_p9 }
 0x1a2   :  { %317 = shalt.err (!%p314_p11)
}
 0x1a3   :  { %165 = dma.vmem_to_hbm [thread:$0]  %s163_s16, 128, %s453_s6, [#allocation9]  }
 0x1a4   :  { %322 = dma.done.wait [#allocation4], 128  }
 0x1a5   :  { %323 = vsyncadd [#allocation4], 4294967168 }
 0x1a6   :  { %324 = dma.done.wait [#allocation9], 256  }
 0x1a7   :  { %325 = vsyncadd [#allocation9], 4294967040 }
 0x1a8   :  { %175 = vsyncpa [#allocation3], 1 }
 0x1a9   :  { %176 = vsyncpa [#allocation6], 1 }
 0x1aa   :  { %177 = vsyncpa [#allocation4], 1 }
 0x1ab   :  { %178 = vsyncpa [#allocation9], 1 }

</bundles_post_ra>
